<compile_context>
chip_gen: v7x
topology: tpu7x:2x2x1
jax: 0.10.0
libtpu: 0.0.40
codegen_flags: <defaults>
</compile_context>

<pallas_src>
import functools

import jax
import jax.numpy as jnp
from jax.experimental import pallas as pl
from jax.experimental.pallas import tpu as pltpu


# ---------------------------------------------------------------------------
# Kernel
# ---------------------------------------------------------------------------

def _layernorm(x, g, b, eps=1e-5):
    mu = jnp.mean(x, axis=-1, keepdims=True)
    xc = x - mu
    var = jnp.mean(xc * xc, axis=-1, keepdims=True)
    return xc * jax.lax.rsqrt(var + eps) * g + b


def _encoder_stack_kernel(num_heads, seq_len,
                          x_ref, wqkv_ref, wo_ref, w1_ref, w2_ref, vec_ref,
                          o_ref,
                          h_scr, qkv_scr, attn_scr):
    # grid = (batch_blocks, num_layers); this block owns Bb batch elements'
    # (Bb*S, D) slab and runs all layers sequentially with the activation
    # resident in the VMEM scratch `h_scr`.
    layer = pl.program_id(1)
    n_layers = pl.num_programs(1)

    @pl.when(layer == 0)
    def _():
        h_scr[...] = x_ref[...]

    R, D = h_scr.shape                 # R = Bb * S rows in this block
    S = seq_len
    Bb = R // S
    H = num_heads
    hd = D // H
    FF = w1_ref.shape[1]
    scale = float(hd) ** -0.5

    # Packed per-layer vectors (single DMA instead of eight tiny ones).
    vec = vec_ref[...]                          # (8, W)
    bqkv = vec[0:1, 0:3 * D]
    bo   = vec[1:2, 0:D]
    b1   = vec[2:3, 0:FF]
    b2   = vec[3:4, 0:D]
    g1   = vec[4:5, 0:D]
    be1  = vec[5:6, 0:D]
    g2   = vec[6:7, 0:D]
    be2  = vec[7:8, 0:D]

    h = h_scr[...]                               # (R, D) f32 resident activation
    hb = h.astype(jnp.bfloat16)

    # Fused QKV projection over all Bb*S rows (batch-blocked M fills the MXU);
    # bf16 operands, f32 accumulation.  Staged in VMEM so the per-batch loop
    # below can slice it with dynamic sublane offsets.
    qkv_scr[...] = (jnp.dot(hb, wqkv_ref[...],
                            preferred_element_type=jnp.float32) + bqkv)

    wo_b = wo_ref[...]                           # (D, D) bf16, loaded once

    # Self-attention: fori_loop over the Bb batch elements inside the block
    # (bounds the live range of the per-head (S, S) score tensors to one batch
    # element), short static loop over heads, and the output projection folded
    # into the head loop so no lane-dim concat of hd-wide pieces is needed.
    def batch_body(b, carry):
        row0 = b * S
        if S % 8 == 0:
            row0 = pl.multiple_of(row0, 8)
        qkv_b = qkv_scr[pl.ds(row0, S), :]       # (S, 3D) f32
        attn_b = jnp.zeros((S, D), jnp.float32)
        for hh in range(H):                      # H is small & static
            q = (qkv_b[:, hh * hd:(hh + 1) * hd] * scale).astype(jnp.bfloat16)
            k = qkv_b[:, D + hh * hd:D + (hh + 1) * hd].astype(jnp.bfloat16)
            v = qkv_b[:, 2 * D + hh * hd:2 * D + (hh + 1) * hd].astype(jnp.bfloat16)
            # q @ k^T without materializing a transpose (contract last dims).
            s = jax.lax.dot_general(q, k, (((1,), (1,)), ((), ())),
                                    preferred_element_type=jnp.float32)  # (S, S)
            s = s - jnp.max(s, axis=-1, keepdims=True)
            p = jnp.exp(s)
            p = p * pl.reciprocal(jnp.sum(p, axis=-1, keepdims=True), approx=True)
            head = jnp.dot(p.astype(jnp.bfloat16), v,
                           preferred_element_type=jnp.float32)           # (S, hd)
            # Fold the output projection into the head loop (no concat).
            attn_b = attn_b + jnp.dot(head.astype(jnp.bfloat16),
                                      wo_b[hh * hd:(hh + 1) * hd, :],
                                      preferred_element_type=jnp.float32)
        attn_scr[pl.ds(row0, S), :] = attn_b
        return carry

    jax.lax.fori_loop(0, Bb, batch_body, 0, unroll=(Bb <= 4))
    # TODO(synk): for long sequences, tile K/V with an online (flash-style)
    # softmax here instead of materializing the full (S, S) score matrix.

    attn = attn_scr[...] + bo                    # (R, D)

    # Residual + LayerNorm 1 (post-norm; dropout = identity, eval semantics).
    y = _layernorm(h + attn, g1, be1)

    # Feed-forward: linear1 -> ReLU (PyTorch default) -> linear2.
    mid = jnp.maximum(
        jnp.dot(y.astype(jnp.bfloat16), w1_ref[...],
                preferred_element_type=jnp.float32) + b1, 0.0)
    ff = jnp.dot(mid.astype(jnp.bfloat16), w2_ref[...],
                 preferred_element_type=jnp.float32) + b2

    # Residual + LayerNorm 2.
    z = _layernorm(y + ff, g2, be2)

    h_scr[...] = z

    # Only the last layer's activation ever touches the output buffer; the
    # output block index is constant along the layer axis, so HBM writeback
    # happens once per batch block.
    @pl.when(layer == n_layers - 1)
    def _():
        o_ref[...] = z


# ---------------------------------------------------------------------------
# Wrapper
# ---------------------------------------------------------------------------

def _pick_batch_block(B, S, target_rows=256):
    """Largest divisor of B with Bb*S <~ target rows, keeping >= 2 blocks."""
    bb = 1
    for cand in range(1, B + 1):
        if B % cand != 0:
            continue
        if cand * S > max(target_rows, S):
            continue
        if B // cand < 2 and B >= 2:
            continue
        bb = cand
    return bb


def transformer_encoder_forward(src, params, *, num_heads, batch_block=None):
    """src: (S, B, D) seq-first, matching PyTorch nn.TransformerEncoder."""
    S, B, D = src.shape
    wqkv, wo, w1, w2, vecs = params
    num_layers = wqkv.shape[0]
    FF = w1.shape[-1]
    W = vecs.shape[-1]

    assert D % num_heads == 0, (D, num_heads)
    if batch_block is None:
        batch_block = _pick_batch_block(B, S)
    Bb = batch_block
    assert B % Bb == 0, (B, Bb)

    # Batch-major (B*S, D) rows: each grid step along the batch axis owns a
    # contiguous (Bb*S, D) slab, independent across batch -> "parallel" axis.
    # TODO(synk): accept batch-first activations upstream to drop this
    # transpose (it costs one extra HBM read+write of the activation).
    x = jnp.transpose(src, (1, 0, 2)).reshape(B * S, D).astype(jnp.float32)

    # Explicit VMEM budget: double-buffered per-layer bf16 weights + packed
    # vectors, double-buffered activation in/out blocks, three f32 scratch
    # slabs, plus headroom for scores/temporaries.
    layer_w_bytes = 2 * (D * 3 * D + D * D + D * FF + FF * D) + 4 * 8 * W
    act_blk_bytes = 4 * Bb * S * D
    scratch_bytes = 4 * Bb * S * (D + 3 * D + D)
    needed = 2 * layer_w_bytes + 4 * act_blk_bytes + scratch_bytes + (1 << 20)
    vmem_limit = int(min(128 * 1024 * 1024, max(2 * needed, 16 * 1024 * 1024)))

    kern = functools.partial(_encoder_stack_kernel, num_heads, S)
    per_layer = lambda b, l: (l, 0, 0)
    per_batch = lambda b, l: (b, 0)

    out = pl.pallas_call(
        kern,
        out_shape=jax.ShapeDtypeStruct((B * S, D), jnp.float32),
        grid_spec=pltpu.PrefetchScalarGridSpec(
            num_scalar_prefetch=0,
            grid=(B // Bb, num_layers),
            in_specs=[
                pl.BlockSpec((Bb * S, D), per_batch),          # activation input
                pl.BlockSpec((None, D, 3 * D), per_layer),     # W_qkv  (bf16)
                pl.BlockSpec((None, D, D), per_layer),         # W_out  (bf16)
                pl.BlockSpec((None, D, FF), per_layer),        # W_ff1  (bf16)
                pl.BlockSpec((None, FF, D), per_layer),        # W_ff2  (bf16)
                pl.BlockSpec((None, 8, W), per_layer),         # packed bias/LN
            ],
            out_specs=pl.BlockSpec((Bb * S, D), per_batch),
            scratch_shapes=[
                pltpu.VMEM((Bb * S, D), jnp.float32),      # resident activation
                pltpu.VMEM((Bb * S, 3 * D), jnp.float32),  # staged QKV
                pltpu.VMEM((Bb * S, D), jnp.float32),      # attention output
            ],
        ),
        compiler_params=pltpu.CompilerParams(
            dimension_semantics=("parallel", "arbitrary"),
            vmem_limit_bytes=vmem_limit),
    )(x, wqkv, wo, w1, w2, vecs)

    return jnp.transpose(out.reshape(B, S, D), (1, 0, 2))      # back to (S, B, D)


# ---------------------------------------------------------------------------
# Deterministic synthetic parameters (deepcopy semantics: identical per layer)
# ---------------------------------------------------------------------------

def init_params(key, d_model, dim_ff, num_layers):
    ks = jax.random.split(key, 8)

    def u(k, shape, scale=0.1):
        return jax.random.uniform(k, shape, jnp.float32, -scale, scale)

    # PyTorch layouts: in_proj_weight (3D, D), out_proj (D, D), linear1 (FF, D),
    # linear2 (D, FF); transposed to x @ W layout and pre-cast to bf16.
    wqkv = u(ks[0], (3 * d_model, d_model))
    wo = u(ks[1], (d_model, d_model))
    w1 = u(ks[2], (dim_ff, d_model))
    w2 = u(ks[3], (d_model, dim_ff))
    bqkv = u(ks[4], (3 * d_model,), 0.05)
    bo = u(ks[5], (d_model,), 0.05)
    b1 = u(ks[6], (dim_ff,), 0.05)
    b2 = u(ks[7], (d_model,), 0.05)

    # Pack the 8 small per-layer vectors into one (8, W) slab (one DMA/step).
    # rows: 0 b_qkv, 1 b_out, 2 b_ff1, 3 b_ff2, 4 ln1_g, 5 ln1_b, 6 ln2_g, 7 ln2_b
    W = max(3 * d_model, dim_ff, d_model)
    vecs = jnp.zeros((8, W), jnp.float32)
    vecs = vecs.at[0, :3 * d_model].set(bqkv)
    vecs = vecs.at[1, :d_model].set(bo)
    vecs = vecs.at[2, :dim_ff].set(b1)
    vecs = vecs.at[3, :d_model].set(b2)
    vecs = vecs.at[4, :d_model].set(1.0)        # ln1 gamma (betas stay zero)
    vecs = vecs.at[6, :d_model].set(1.0)        # ln2 gamma

    # _get_clones deep-copies one layer -> identical initial params per layer;
    # stacked with a leading layer axis so distinct per-layer weights work too.
    def stack(a):
        return jnp.stack([a] * num_layers, axis=0)

    return (stack(wqkv.T.astype(jnp.bfloat16)),   # (NL, D, 3D)
            stack(wo.T.astype(jnp.bfloat16)),     # (NL, D, D)
            stack(w1.T.astype(jnp.bfloat16)),     # (NL, D, FF)
            stack(w2.T.astype(jnp.bfloat16)),     # (NL, FF, D)
            stack(vecs))                          # (NL, 8, W)


# ---------------------------------------------------------------------------
# Main
# ---------------------------------------------------------------------------

if __name__ == "__main__":
    S, B = 8, 2                   # seq length, batch (seq-first src: (S, B, D))
    D, H, FF, NL = 32, 4, 64, 2   # d_model, nhead, dim_feedforward, num_layers

    key = jax.random.PRNGKey(0)
    kp, kx = jax.random.split(key)
    params = init_params(kp, D, FF, NL)
    src = jax.random.normal(kx, (S, B, D), dtype=jnp.float32)

    out = transformer_encoder_forward(src, params, num_heads=H)
    jax.block_until_ready(out)

    assert out.shape == (S, B, D), out.shape
    assert bool(jnp.all(jnp.isfinite(out)))
    print("KERNEL_OK")
</pallas_src>

<mosaic_0001>
module attributes {stable_mosaic.version = 11 : i64} {
  func.func @_encoder_stack_kernel(%arg0: i32, %arg1: i32, %arg2: memref<8x32xf32, #tpu.memory_space<vmem>>, %arg3: memref<1x32x96xbf16, #tpu.memory_space<vmem>>, %arg4: memref<1x32x32xbf16, #tpu.memory_space<vmem>>, %arg5: memref<1x32x64xbf16, #tpu.memory_space<vmem>>, %arg6: memref<1x64x32xbf16, #tpu.memory_space<vmem>>, %arg7: memref<1x8x96xf32, #tpu.memory_space<vmem>>, %arg8: memref<8x32xf32, #tpu.memory_space<vmem>>, %arg9: memref<8x32xf32, #tpu.memory_space<vmem>>, %arg10: memref<8x96xf32, #tpu.memory_space<vmem>>, %arg11: memref<8x32xf32, #tpu.memory_space<vmem>>) attributes {dimension_semantics = [#tpu.dimension_semantics<parallel>, #tpu.dimension_semantics<arbitrary>], iteration_bounds = array<i64: 2, 2>, scalar_prefetch = 0 : i64, scratch_operands = 3 : i64, tpu.core_type = #tpu.core_type<tc>, window_params = [{transform_indices = @transform_0, window_bounds = array<i64: 8, 32>}, {transform_indices = @transform_1, window_bounds = array<i64: 1, 32, 96>}, {transform_indices = @transform_2, window_bounds = array<i64: 1, 32, 32>}, {transform_indices = @transform_3, window_bounds = array<i64: 1, 32, 64>}, {transform_indices = @transform_4, window_bounds = array<i64: 1, 64, 32>}, {transform_indices = @transform_5, window_bounds = array<i64: 1, 8, 96>}, {transform_indices = @transform_6, window_bounds = array<i64: 8, 32>}]} {
    %c0_i32 = arith.constant 0 : i32
    %0 = arith.cmpi eq, %arg1, %c0_i32 : i32
    %1 = arith.extui %0 : i1 to i32
    %c0_i32_0 = arith.constant 0 : i32
    %2 = arith.cmpi ne, %1, %c0_i32_0 : i32
    scf.if %2 {
      %c0_66 = arith.constant 0 : index
      %c0_67 = arith.constant 0 : index
      %193 = vector.load %arg2[%c0_66, %c0_67] : memref<8x32xf32, #tpu.memory_space<vmem>>, vector<8x32xf32>
      %c0_68 = arith.constant 0 : index
      %c0_69 = arith.constant 0 : index
      %194 = vector.load %arg9[%c0_68, %c0_69] : memref<8x32xf32, #tpu.memory_space<vmem>>, vector<8x32xf32>
      tpu.vector_store %arg9[%c0_68, %c0_69], %193 {strides = array<i32>} : memref<8x32xf32, #tpu.memory_space<vmem>>, vector<8x32xf32>,
    } else {
    }
    %c0 = arith.constant 0 : index
    %c0_1 = arith.constant 0 : index
    %c0_2 = arith.constant 0 : index
    %3 = vector.load %arg7[%c0, %c0_1, %c0_2] : memref<1x8x96xf32, #tpu.memory_space<vmem>>, vector<1x8x96xf32>
    %4 = vector.shape_cast %3 : vector<1x8x96xf32> to vector<8x96xf32>
    %5 = vector.extract_strided_slice %4 {offsets = [0, 0], sizes = [1, 96], strides = [1, 1]} : vector<8x96xf32> to vector<1x96xf32>
    %6 = vector.extract_strided_slice %4 {offsets = [1, 0], sizes = [1, 32], strides = [1, 1]} : vector<8x96xf32> to vector<1x32xf32>
    %7 = vector.extract_strided_slice %4 {offsets = [2, 0], sizes = [1, 64], strides = [1, 1]} : vector<8x96xf32> to vector<1x64xf32>
    %8 = vector.extract_strided_slice %4 {offsets = [3, 0], sizes = [1, 32], strides = [1, 1]} : vector<8x96xf32> to vector<1x32xf32>
    %9 = vector.extract_strided_slice %4 {offsets = [4, 0], sizes = [1, 32], strides = [1, 1]} : vector<8x96xf32> to vector<1x32xf32>
    %10 = vector.extract_strided_slice %4 {offsets = [5, 0], sizes = [1, 32], strides = [1, 1]} : vector<8x96xf32> to vector<1x32xf32>
    %11 = vector.extract_strided_slice %4 {offsets = [6, 0], sizes = [1, 32], strides = [1, 1]} : vector<8x96xf32> to vector<1x32xf32>
    %12 = vector.extract_strided_slice %4 {offsets = [7, 0], sizes = [1, 32], strides = [1, 1]} : vector<8x96xf32> to vector<1x32xf32>
    %c0_3 = arith.constant 0 : index
    %c0_4 = arith.constant 0 : index
    %13 = vector.load %arg9[%c0_3, %c0_4] : memref<8x32xf32, #tpu.memory_space<vmem>>, vector<8x32xf32>
    %14 = arith.truncf %13 : vector<8x32xf32> to vector<8x32xbf16>
    %c0_5 = arith.constant 0 : index
    %c0_6 = arith.constant 0 : index
    %c0_7 = arith.constant 0 : index
    %15 = vector.load %arg3[%c0_5, %c0_6, %c0_7] : memref<1x32x96xbf16, #tpu.memory_space<vmem>>, vector<1x32x96xbf16>
    %16 = vector.shape_cast %15 : vector<1x32x96xbf16> to vector<32x96xbf16>
    %cst = arith.constant dense<0.000000e+00> : vector<8x96xf32>
    %17 = tpu.matmul %14, %16, %cst {dimension_numbers = #tpu.dot_dimension_numbers<[1], [0], [0], [1], [0, 0, 1, 1], [], []>} : vector<8x32xbf16>, vector<32x96xbf16>, vector<8x96xf32> -> vector<8x96xf32>
    %18 = vector.broadcast %5 : vector<1x96xf32> to vector<8x96xf32>
    %19 = arith.addf %17, %18 : vector<8x96xf32>
    %c0_8 = arith.constant 0 : index
    %c0_9 = arith.constant 0 : index
    %20 = vector.load %arg10[%c0_8, %c0_9] : memref<8x96xf32, #tpu.memory_space<vmem>>, vector<8x96xf32>
    tpu.vector_store %arg10[%c0_8, %c0_9], %19 {strides = array<i32>} : memref<8x96xf32, #tpu.memory_space<vmem>>, vector<8x96xf32>,
    %c0_10 = arith.constant 0 : index
    %c0_11 = arith.constant 0 : index
    %c0_12 = arith.constant 0 : index
    %21 = vector.load %arg4[%c0_10, %c0_11, %c0_12] : memref<1x32x32xbf16, #tpu.memory_space<vmem>>, vector<1x32x32xbf16>
    %22 = vector.shape_cast %21 : vector<1x32x32xbf16> to vector<32x32xbf16>
    %c0_i32_13 = arith.constant 0 : i32
    %c8_i32 = arith.constant 8 : i32
    %23 = arith.muli %c0_i32_13, %c8_i32 : i32
    %24 = tpu.assume_multiple %23, 8 : i32
    %25 = arith.index_cast %24 : i32 to index
    %c0_14 = arith.constant 0 : index
    %26 = vector.load %arg10[%25, %c0_14] : memref<8x96xf32, #tpu.memory_space<vmem>>, vector<8x96xf32>
    %cst_15 = arith.constant 0.000000e+00 : f32
    %27 = vector.broadcast %cst_15 : f32 to vector<8x32xf32>
    %28 = vector.extract_strided_slice %26 {offsets = [0, 0], sizes = [8, 8], strides = [1, 1]} : vector<8x96xf32> to vector<8x8xf32>
    %cst_16 = arith.constant 0.353553385 : f32
    %29 = vector.broadcast %cst_16 : f32 to vector<8x8xf32>
    %30 = arith.mulf %28, %29 : vector<8x8xf32>
    %31 = arith.truncf %30 : vector<8x8xf32> to vector<8x8xbf16>
    %32 = vector.extract_strided_slice %26 {offsets = [0, 32], sizes = [8, 8], strides = [1, 1]} : vector<8x96xf32> to vector<8x8xf32>
    %33 = arith.truncf %32 : vector<8x8xf32> to vector<8x8xbf16>
    %34 = vector.extract_strided_slice %26 {offsets = [0, 64], sizes = [8, 8], strides = [1, 1]} : vector<8x96xf32> to vector<8x8xf32>
    %35 = arith.truncf %34 : vector<8x8xf32> to vector<8x8xbf16>
    %cst_17 = arith.constant dense<0.000000e+00> : vector<8x8xf32>
    %36 = tpu.matmul %31, %33, %cst_17 {dimension_numbers = #tpu.dot_dimension_numbers<[1], [1], [0], [0], [0, 0, 1, 0], [], []>} : vector<8x8xbf16>, vector<8x8xbf16>, vector<8x8xf32> -> vector<8x8xf32>
    %cst_18 = arith.constant dense<0xFF800000> : vector<8xf32>
    %37 = vector.multi_reduction <maximumf>, %36, %cst_18 [1] : vector<8x8xf32> to vector<8xf32>
    %38 = vector.shape_cast %37 : vector<8xf32> to vector<8x1xf32>
    %39 = vector.broadcast %38 : vector<8x1xf32> to vector<8x8xf32>
    %40 = arith.subf %36, %39 : vector<8x8xf32>
    %41 = math.exp %40 : vector<8x8xf32>
    %cst_19 = arith.constant dense<0.000000e+00> : vector<8xf32>
    %42 = vector.multi_reduction <add>, %41, %cst_19 [1] : vector<8x8xf32> to vector<8xf32>
    %43 = vector.shape_cast %42 : vector<8xf32> to vector<8x1xf32>
    %44 = tpu.reciprocal %43 {approx = true} : vector<8x1xf32> -> vector<8x1xf32>
    %45 = vector.broadcast %44 : vector<8x1xf32> to vector<8x8xf32>
    %46 = arith.mulf %41, %45 : vector<8x8xf32>
    %47 = arith.truncf %46 : vector<8x8xf32> to vector<8x8xbf16>
    %cst_20 = arith.constant dense<0.000000e+00> : vector<8x8xf32>
    %48 = tpu.matmul %47, %35, %cst_20 {dimension_numbers = #tpu.dot_dimension_numbers<[1], [0], [0], [1], [0, 0, 1, 1], [], []>} : vector<8x8xbf16>, vector<8x8xbf16>, vector<8x8xf32> -> vector<8x8xf32>
    %49 = arith.truncf %48 : vector<8x8xf32> to vector<8x8xbf16>
    %50 = vector.extract_strided_slice %22 {offsets = [0, 0], sizes = [8, 32], strides = [1, 1]} : vector<32x32xbf16> to vector<8x32xbf16>
    %cst_21 = arith.constant dense<0.000000e+00> : vector<8x32xf32>
    %51 = tpu.matmul %49, %50, %cst_21 {dimension_numbers = #tpu.dot_dimension_numbers<[1], [0], [0], [1], [0, 0, 1, 1], [], []>} : vector<8x8xbf16>, vector<8x32xbf16>, vector<8x32xf32> -> vector<8x32xf32>
    %52 = arith.addf %27, %51 : vector<8x32xf32>
    %53 = vector.extract_strided_slice %26 {offsets = [0, 8], sizes = [8, 8], strides = [1, 1]} : vector<8x96xf32> to vector<8x8xf32>
    %cst_22 = arith.constant 0.353553385 : f32
    %54 = vector.broadcast %cst_22 : f32 to vector<8x8xf32>
    %55 = arith.mulf %53, %54 : vector<8x8xf32>
    %56 = arith.truncf %55 : vector<8x8xf32> to vector<8x8xbf16>
    %57 = vector.extract_strided_slice %26 {offsets = [0, 40], sizes = [8, 8], strides = [1, 1]} : vector<8x96xf32> to vector<8x8xf32>
    %58 = arith.truncf %57 : vector<8x8xf32> to vector<8x8xbf16>
    %59 = vector.extract_strided_slice %26 {offsets = [0, 72], sizes = [8, 8], strides = [1, 1]} : vector<8x96xf32> to vector<8x8xf32>
    %60 = arith.truncf %59 : vector<8x8xf32> to vector<8x8xbf16>
    %cst_23 = arith.constant dense<0.000000e+00> : vector<8x8xf32>
    %61 = tpu.matmul %56, %58, %cst_23 {dimension_numbers = #tpu.dot_dimension_numbers<[1], [1], [0], [0], [0, 0, 1, 0], [], []>} : vector<8x8xbf16>, vector<8x8xbf16>, vector<8x8xf32> -> vector<8x8xf32>
    %cst_24 = arith.constant dense<0xFF800000> : vector<8xf32>
    %62 = vector.multi_reduction <maximumf>, %61, %cst_24 [1] : vector<8x8xf32> to vector<8xf32>
    %63 = vector.shape_cast %62 : vector<8xf32> to vector<8x1xf32>
    %64 = vector.broadcast %63 : vector<8x1xf32> to vector<8x8xf32>
    %65 = arith.subf %61, %64 : vector<8x8xf32>
    %66 = math.exp %65 : vector<8x8xf32>
    %cst_25 = arith.constant dense<0.000000e+00> : vector<8xf32>
    %67 = vector.multi_reduction <add>, %66, %cst_25 [1] : vector<8x8xf32> to vector<8xf32>
    %68 = vector.shape_cast %67 : vector<8xf32> to vector<8x1xf32>
    %69 = tpu.reciprocal %68 {approx = true} : vector<8x1xf32> -> vector<8x1xf32>
    %70 = vector.broadcast %69 : vector<8x1xf32> to vector<8x8xf32>
    %71 = arith.mulf %66, %70 : vector<8x8xf32>
    %72 = arith.truncf %71 : vector<8x8xf32> to vector<8x8xbf16>
    %cst_26 = arith.constant dense<0.000000e+00> : vector<8x8xf32>
    %73 = tpu.matmul %72, %60, %cst_26 {dimension_numbers = #tpu.dot_dimension_numbers<[1], [0], [0], [1], [0, 0, 1, 1], [], []>} : vector<8x8xbf16>, vector<8x8xbf16>, vector<8x8xf32> -> vector<8x8xf32>
    %74 = arith.truncf %73 : vector<8x8xf32> to vector<8x8xbf16>
    %75 = vector.extract_strided_slice %22 {offsets = [8, 0], sizes = [8, 32], strides = [1, 1]} : vector<32x32xbf16> to vector<8x32xbf16>
    %cst_27 = arith.constant dense<0.000000e+00> : vector<8x32xf32>
    %76 = tpu.matmul %74, %75, %cst_27 {dimension_numbers = #tpu.dot_dimension_numbers<[1], [0], [0], [1], [0, 0, 1, 1], [], []>} : vector<8x8xbf16>, vector<8x32xbf16>, vector<8x32xf32> -> vector<8x32xf32>
    %77 = arith.addf %52, %76 : vector<8x32xf32>
    %78 = vector.extract_strided_slice %26 {offsets = [0, 16], sizes = [8, 8], strides = [1, 1]} : vector<8x96xf32> to vector<8x8xf32>
    %cst_28 = arith.constant 0.353553385 : f32
    %79 = vector.broadcast %cst_28 : f32 to vector<8x8xf32>
    %80 = arith.mulf %78, %79 : vector<8x8xf32>
    %81 = arith.truncf %80 : vector<8x8xf32> to vector<8x8xbf16>
    %82 = vector.extract_strided_slice %26 {offsets = [0, 48], sizes = [8, 8], strides = [1, 1]} : vector<8x96xf32> to vector<8x8xf32>
    %83 = arith.truncf %82 : vector<8x8xf32> to vector<8x8xbf16>
    %84 = vector.extract_strided_slice %26 {offsets = [0, 80], sizes = [8, 8], strides = [1, 1]} : vector<8x96xf32> to vector<8x8xf32>
    %85 = arith.truncf %84 : vector<8x8xf32> to vector<8x8xbf16>
    %cst_29 = arith.constant dense<0.000000e+00> : vector<8x8xf32>
    %86 = tpu.matmul %81, %83, %cst_29 {dimension_numbers = #tpu.dot_dimension_numbers<[1], [1], [0], [0], [0, 0, 1, 0], [], []>} : vector<8x8xbf16>, vector<8x8xbf16>, vector<8x8xf32> -> vector<8x8xf32>
    %cst_30 = arith.constant dense<0xFF800000> : vector<8xf32>
    %87 = vector.multi_reduction <maximumf>, %86, %cst_30 [1] : vector<8x8xf32> to vector<8xf32>
    %88 = vector.shape_cast %87 : vector<8xf32> to vector<8x1xf32>
    %89 = vector.broadcast %88 : vector<8x1xf32> to vector<8x8xf32>
    %90 = arith.subf %86, %89 : vector<8x8xf32>
    %91 = math.exp %90 : vector<8x8xf32>
    %cst_31 = arith.constant dense<0.000000e+00> : vector<8xf32>
    %92 = vector.multi_reduction <add>, %91, %cst_31 [1] : vector<8x8xf32> to vector<8xf32>
    %93 = vector.shape_cast %92 : vector<8xf32> to vector<8x1xf32>
    %94 = tpu.reciprocal %93 {approx = true} : vector<8x1xf32> -> vector<8x1xf32>
    %95 = vector.broadcast %94 : vector<8x1xf32> to vector<8x8xf32>
    %96 = arith.mulf %91, %95 : vector<8x8xf32>
    %97 = arith.truncf %96 : vector<8x8xf32> to vector<8x8xbf16>
    %cst_32 = arith.constant dense<0.000000e+00> : vector<8x8xf32>
    %98 = tpu.matmul %97, %85, %cst_32 {dimension_numbers = #tpu.dot_dimension_numbers<[1], [0], [0], [1], [0, 0, 1, 1], [], []>} : vector<8x8xbf16>, vector<8x8xbf16>, vector<8x8xf32> -> vector<8x8xf32>
    %99 = arith.truncf %98 : vector<8x8xf32> to vector<8x8xbf16>
    %100 = vector.extract_strided_slice %22 {offsets = [16, 0], sizes = [8, 32], strides = [1, 1]} : vector<32x32xbf16> to vector<8x32xbf16>
    %cst_33 = arith.constant dense<0.000000e+00> : vector<8x32xf32>
    %101 = tpu.matmul %99, %100, %cst_33 {dimension_numbers = #tpu.dot_dimension_numbers<[1], [0], [0], [1], [0, 0, 1, 1], [], []>} : vector<8x8xbf16>, vector<8x32xbf16>, vector<8x32xf32> -> vector<8x32xf32>
    %102 = arith.addf %77, %101 : vector<8x32xf32>
    %103 = vector.extract_strided_slice %26 {offsets = [0, 24], sizes = [8, 8], strides = [1, 1]} : vector<8x96xf32> to vector<8x8xf32>
    %cst_34 = arith.constant 0.353553385 : f32
    %104 = vector.broadcast %cst_34 : f32 to vector<8x8xf32>
    %105 = arith.mulf %103, %104 : vector<8x8xf32>
    %106 = arith.truncf %105 : vector<8x8xf32> to vector<8x8xbf16>
    %107 = vector.extract_strided_slice %26 {offsets = [0, 56], sizes = [8, 8], strides = [1, 1]} : vector<8x96xf32> to vector<8x8xf32>
    %108 = arith.truncf %107 : vector<8x8xf32> to vector<8x8xbf16>
    %109 = vector.extract_strided_slice %26 {offsets = [0, 88], sizes = [8, 8], strides = [1, 1]} : vector<8x96xf32> to vector<8x8xf32>
    %110 = arith.truncf %109 : vector<8x8xf32> to vector<8x8xbf16>
    %cst_35 = arith.constant dense<0.000000e+00> : vector<8x8xf32>
    %111 = tpu.matmul %106, %108, %cst_35 {dimension_numbers = #tpu.dot_dimension_numbers<[1], [1], [0], [0], [0, 0, 1, 0], [], []>} : vector<8x8xbf16>, vector<8x8xbf16>, vector<8x8xf32> -> vector<8x8xf32>
    %cst_36 = arith.constant dense<0xFF800000> : vector<8xf32>
    %112 = vector.multi_reduction <maximumf>, %111, %cst_36 [1] : vector<8x8xf32> to vector<8xf32>
    %113 = vector.shape_cast %112 : vector<8xf32> to vector<8x1xf32>
    %114 = vector.broadcast %113 : vector<8x1xf32> to vector<8x8xf32>
    %115 = arith.subf %111, %114 : vector<8x8xf32>
    %116 = math.exp %115 : vector<8x8xf32>
    %cst_37 = arith.constant dense<0.000000e+00> : vector<8xf32>
    %117 = vector.multi_reduction <add>, %116, %cst_37 [1] : vector<8x8xf32> to vector<8xf32>
    %118 = vector.shape_cast %117 : vector<8xf32> to vector<8x1xf32>
    %119 = tpu.reciprocal %118 {approx = true} : vector<8x1xf32> -> vector<8x1xf32>
    %120 = vector.broadcast %119 : vector<8x1xf32> to vector<8x8xf32>
    %121 = arith.mulf %116, %120 : vector<8x8xf32>
    %122 = arith.truncf %121 : vector<8x8xf32> to vector<8x8xbf16>
    %cst_38 = arith.constant dense<0.000000e+00> : vector<8x8xf32>
    %123 = tpu.matmul %122, %110, %cst_38 {dimension_numbers = #tpu.dot_dimension_numbers<[1], [0], [0], [1], [0, 0, 1, 1], [], []>} : vector<8x8xbf16>, vector<8x8xbf16>, vector<8x8xf32> -> vector<8x8xf32>
    %124 = arith.truncf %123 : vector<8x8xf32> to vector<8x8xbf16>
    %125 = vector.extract_strided_slice %22 {offsets = [24, 0], sizes = [8, 32], strides = [1, 1]} : vector<32x32xbf16> to vector<8x32xbf16>
    %cst_39 = arith.constant dense<0.000000e+00> : vector<8x32xf32>
    %126 = tpu.matmul %124, %125, %cst_39 {dimension_numbers = #tpu.dot_dimension_numbers<[1], [0], [0], [1], [0, 0, 1, 1], [], []>} : vector<8x8xbf16>, vector<8x32xbf16>, vector<8x32xf32> -> vector<8x32xf32>
    %127 = arith.addf %102, %126 : vector<8x32xf32>
    %128 = arith.index_cast %24 : i32 to index
    %c0_40 = arith.constant 0 : index
    %129 = vector.load %arg11[%128, %c0_40] : memref<8x32xf32, #tpu.memory_space<vmem>>, vector<8x32xf32>
    tpu.vector_store %arg11[%128, %c0_40], %127 {strides = array<i32>} : memref<8x32xf32, #tpu.memory_space<vmem>>, vector<8x32xf32>,
    %c1_i32 = arith.constant 1 : i32
    %c0_41 = arith.constant 0 : index
    %c0_42 = arith.constant 0 : index
    %130 = vector.load %arg11[%c0_41, %c0_42] : memref<8x32xf32, #tpu.memory_space<vmem>>, vector<8x32xf32>
    %131 = vector.broadcast %6 : vector<1x32xf32> to vector<8x32xf32>
    %132 = arith.addf %130, %131 : vector<8x32xf32>
    %133 = arith.addf %13, %132 : vector<8x32xf32>
    %cst_43 = arith.constant dense<0.000000e+00> : vector<8xf32>
    %134 = vector.multi_reduction <add>, %133, %cst_43 [1] : vector<8x32xf32> to vector<8xf32>
    %135 = vector.shape_cast %134 : vector<8xf32> to vector<8x1xf32>
    %cst_44 = arith.constant 3.200000e+01 : f32
    %136 = vector.broadcast %cst_44 : f32 to vector<8x1xf32>
    %137 = arith.divf %135, %136 : vector<8x1xf32>
    %138 = vector.broadcast %137 : vector<8x1xf32> to vector<8x32xf32>
    %139 = arith.subf %133, %138 : vector<8x32xf32>
    %140 = arith.mulf %139, %139 : vector<8x32xf32>
    %cst_45 = arith.constant dense<0.000000e+00> : vector<8xf32>
    %141 = vector.multi_reduction <add>, %140, %cst_45 [1] : vector<8x32xf32> to vector<8xf32>
    %142 = vector.shape_cast %141 : vector<8xf32> to vector<8x1xf32>
    %cst_46 = arith.constant 3.200000e+01 : f32
    %143 = vector.broadcast %cst_46 : f32 to vector<8x1xf32>
    %144 = arith.divf %142, %143 : vector<8x1xf32>
    %cst_47 = arith.constant 9.99999974E-6 : f32
    %145 = vector.broadcast %cst_47 : f32 to vector<8x1xf32>
    %146 = arith.addf %144, %145 : vector<8x1xf32>
    %147 = math.rsqrt %146 : vector<8x1xf32>
    %148 = vector.broadcast %147 : vector<8x1xf32> to vector<8x32xf32>
    %149 = arith.mulf %139, %148 : vector<8x32xf32>
    %150 = vector.broadcast %9 : vector<1x32xf32> to vector<8x32xf32>
    %151 = arith.mulf %149, %150 : vector<8x32xf32>
    %152 = vector.broadcast %10 : vector<1x32xf32> to vector<8x32xf32>
    %153 = arith.addf %151, %152 : vector<8x32xf32>
    %154 = arith.truncf %153 : vector<8x32xf32> to vector<8x32xbf16>
    %c0_48 = arith.constant 0 : index
    %c0_49 = arith.constant 0 : index
    %c0_50 = arith.constant 0 : index
    %155 = vector.load %arg5[%c0_48, %c0_49, %c0_50] : memref<1x32x64xbf16, #tpu.memory_space<vmem>>, vector<1x32x64xbf16>
    %156 = vector.shape_cast %155 : vector<1x32x64xbf16> to vector<32x64xbf16>
    %cst_51 = arith.constant dense<0.000000e+00> : vector<8x64xf32>
    %157 = tpu.matmul %154, %156, %cst_51 {dimension_numbers = #tpu.dot_dimension_numbers<[1], [0], [0], [1], [0, 0, 1, 1], [], []>} : vector<8x32xbf16>, vector<32x64xbf16>, vector<8x64xf32> -> vector<8x64xf32>
    %158 = vector.broadcast %7 : vector<1x64xf32> to vector<8x64xf32>
    %159 = arith.addf %157, %158 : vector<8x64xf32>
    %cst_52 = arith.constant 0.000000e+00 : f32
    %160 = vector.broadcast %cst_52 : f32 to vector<8x64xf32>
    %161 = arith.maximumf %159, %160 : vector<8x64xf32>
    %162 = arith.truncf %161 : vector<8x64xf32> to vector<8x64xbf16>
    %c0_53 = arith.constant 0 : index
    %c0_54 = arith.constant 0 : index
    %c0_55 = arith.constant 0 : index
    %163 = vector.load %arg6[%c0_53, %c0_54, %c0_55] : memref<1x64x32xbf16, #tpu.memory_space<vmem>>, vector<1x64x32xbf16>
    %164 = vector.shape_cast %163 : vector<1x64x32xbf16> to vector<64x32xbf16>
    %cst_56 = arith.constant dense<0.000000e+00> : vector<8x32xf32>
    %165 = tpu.matmul %162, %164, %cst_56 {dimension_numbers = #tpu.dot_dimension_numbers<[1], [0], [0], [1], [0, 0, 1, 1], [], []>} : vector<8x64xbf16>, vector<64x32xbf16>, vector<8x32xf32> -> vector<8x32xf32>
    %166 = vector.broadcast %8 : vector<1x32xf32> to vector<8x32xf32>
    %167 = arith.addf %165, %166 : vector<8x32xf32>
    %168 = arith.addf %153, %167 : vector<8x32xf32>
    %cst_57 = arith.constant dense<0.000000e+00> : vector<8xf32>
    %169 = vector.multi_reduction <add>, %168, %cst_57 [1] : vector<8x32xf32> to vector<8xf32>
    %170 = vector.shape_cast %169 : vector<8xf32> to vector<8x1xf32>
    %cst_58 = arith.constant 3.200000e+01 : f32
    %171 = vector.broadcast %cst_58 : f32 to vector<8x1xf32>
    %172 = arith.divf %170, %171 : vector<8x1xf32>
    %173 = vector.broadcast %172 : vector<8x1xf32> to vector<8x32xf32>
    %174 = arith.subf %168, %173 : vector<8x32xf32>
    %175 = arith.mulf %174, %174 : vector<8x32xf32>
    %cst_59 = arith.constant dense<0.000000e+00> : vector<8xf32>
    %176 = vector.multi_reduction <add>, %175, %cst_59 [1] : vector<8x32xf32> to vector<8xf32>
    %177 = vector.shape_cast %176 : vector<8xf32> to vector<8x1xf32>
    %cst_60 = arith.constant 3.200000e+01 : f32
    %178 = vector.broadcast %cst_60 : f32 to vector<8x1xf32>
    %179 = arith.divf %177, %178 : vector<8x1xf32>
    %cst_61 = arith.constant 9.99999974E-6 : f32
    %180 = vector.broadcast %cst_61 : f32 to vector<8x1xf32>
    %181 = arith.addf %179, %180 : vector<8x1xf32>
    %182 = math.rsqrt %181 : vector<8x1xf32>
    %183 = vector.broadcast %182 : vector<8x1xf32> to vector<8x32xf32>
    %184 = arith.mulf %174, %183 : vector<8x32xf32>
    %185 = vector.broadcast %11 : vector<1x32xf32> to vector<8x32xf32>
    %186 = arith.mulf %184, %185 : vector<8x32xf32>
    %187 = vector.broadcast %12 : vector<1x32xf32> to vector<8x32xf32>
    %188 = arith.addf %186, %187 : vector<8x32xf32>
    %c0_62 = arith.constant 0 : index
    %c0_63 = arith.constant 0 : index
    %189 = vector.load %arg9[%c0_62, %c0_63] : memref<8x32xf32, #tpu.memory_space<vmem>>, vector<8x32xf32>
    tpu.vector_store %arg9[%c0_62, %c0_63], %188 {strides = array<i32>} : memref<8x32xf32, #tpu.memory_space<vmem>>, vector<8x32xf32>,
    %c1_i32_64 = arith.constant 1 : i32
    %190 = arith.cmpi eq, %arg1, %c1_i32_64 : i32
    %191 = arith.extui %190 : i1 to i32
    %c0_i32_65 = arith.constant 0 : i32
    %192 = arith.cmpi ne, %191, %c0_i32_65 : i32
    scf.if %192 {
      %c0_66 = arith.constant 0 : index
      %c0_67 = arith.constant 0 : index
      %193 = vector.load %arg8[%c0_66, %c0_67] : memref<8x32xf32, #tpu.memory_space<vmem>>, vector<8x32xf32>
      tpu.vector_store %arg8[%c0_66, %c0_67], %188 {strides = array<i32>} : memref<8x32xf32, #tpu.memory_space<vmem>>, vector<8x32xf32>,
    } else {
    }
    return
  }
  func.func @transform_0(%arg0: i32, %arg1: i32) -> (i32, i32) {
    %c0_i32 = arith.constant 0 : i32
    %c0_i32_0 = arith.constant 0 : i32
    return %arg0, %c0_i32 : i32, i32
  }
  func.func @transform_1(%arg0: i32, %arg1: i32) -> (i32, i32, i32) {
    %c0_i32 = arith.constant 0 : i32
    %c0_i32_0 = arith.constant 0 : i32
    %c0_i32_1 = arith.constant 0 : i32
    return %arg1, %c0_i32, %c0_i32_0 : i32, i32, i32
  }
  func.func @transform_2(%arg0: i32, %arg1: i32) -> (i32, i32, i32) {
    %c0_i32 = arith.constant 0 : i32
    %c0_i32_0 = arith.constant 0 : i32
    %c0_i32_1 = arith.constant 0 : i32
    return %arg1, %c0_i32, %c0_i32_0 : i32, i32, i32
  }
  func.func @transform_3(%arg0: i32, %arg1: i32) -> (i32, i32, i32) {
    %c0_i32 = arith.constant 0 : i32
    %c0_i32_0 = arith.constant 0 : i32
    %c0_i32_1 = arith.constant 0 : i32
    return %arg1, %c0_i32, %c0_i32_0 : i32, i32, i32
  }
  func.func @transform_4(%arg0: i32, %arg1: i32) -> (i32, i32, i32) {
    %c0_i32 = arith.constant 0 : i32
    %c0_i32_0 = arith.constant 0 : i32
    %c0_i32_1 = arith.constant 0 : i32
    return %arg1, %c0_i32, %c0_i32_0 : i32, i32, i32
  }
  func.func @transform_5(%arg0: i32, %arg1: i32) -> (i32, i32, i32) {
    %c0_i32 = arith.constant 0 : i32
    %c0_i32_0 = arith.constant 0 : i32
    %c0_i32_1 = arith.constant 0 : i32
    return %arg1, %c0_i32, %c0_i32_0 : i32, i32, i32
  }
  func.func @transform_6(%arg0: i32, %arg1: i32) -> (i32, i32) {
    %c0_i32 = arith.constant 0 : i32
    %c0_i32_0 = arith.constant 0 : i32
    return %arg0, %c0_i32 : i32, i32
  }
}

</mosaic_0001>

<bundles_post_ra>
// kernel: tpu_custom_call.1
= control target key start
LH: loop header
LB: loop body
LE: loop exit
PB: predicated region body
PF: predicated region fallthrough
CT: control target
= control target key end

     0   :  { %s2308_s0 = inlined_call_operand.hbm [shape: f32[16,32], index: 0, kind: input, shape index: {}]   ;;  %s2309_s1 = inlined_call_operand.vmem [shape: bf16[2,32,96], index: 1, kind: input, shape index: {}]   ;;  %s2310_s2 = inlined_call_operand.vmem [shape: bf16[2,32,32], index: 2, kind: input, shape index: {}]   ;;  %s2311_s3 = inlined_call_operand.vmem [shape: bf16[2,32,64], index: 3, kind: input, shape index: {}]   ;;  %s2312_s4 = inlined_call_operand.vmem [shape: bf16[2,64,32], index: 4, kind: input, shape index: {}]   ;;  %s2313_s5 = inlined_call_operand.vmem [shape: f32[2,8,96], index: 5, kind: input, shape index: {}]   ;;  %s2314_s6 = inlined_call_operand.hbm [shape: f32[16,32], index: 6, kind: output, shape index: {}]  }
   0x1   :  { %2323 = sst [smem:[#allocation20_spill]] %s2308_s0 }
   0x2   :  { %11 = vsyncpa [#allocation6], 0 }
   0x3   :  { %13 = vsyncpa [#allocation6 + $0x1], 0 }
   0x4   :  { %14 = vsyncpa [#allocation7], 0 }
   0x5   :  { %16 = vsyncpa [#allocation7 + $0x1], 0  ;;  %s1953_s21 = smov 0   ;;  %s1955_s22 = smov 0  }
   0x6   :  { %s1957_s23 = smov 0   ;;  %s1959_s24 = smov 0  }
   0x7   :  { %s1961_s25 = smov 0   ;;  %s1963_s26 = smov 0  }
   0x8   :  { %s1965_s27 = smov 0   ;;  %s1967_s28 = smov 0  }
   0x9 LB: > { %2324 = sst [smem:[#allocation11_spill]] %s1873_s21  ;;  %s1456_s29 = sadd.s32 4294967295, %s1901_s28   ;;  %s1901_s28 = sphi %s1967_s28, %s22_s28   ;;  %s1897_s27 = sphi %s1965_s27, %s2351_s27   ;;  %s1893_s26 = sphi %s1963_s26, %s2350_s26   ;;  %s1889_s25 = sphi %s1961_s25, %s2349_s25   ;;  %s1885_s24 = sphi %s1959_s24, %s2348_s24   ;;  %s1881_s23 = sphi %s1957_s23, %s2347_s23   ;;  %s1877_s22 = sphi %s1955_s22, %s2346_s22   ;;  %s1873_s21 = sphi %s1953_s21, %s2345_s21  }
   0xa   : > { %2325 = sst [smem:[#allocation12_spill]] %s1877_s22  ;;  %s1457_s30 = sadd.s32 4294967294, %s1901_s28  }
   0xb   : > { %2326 = sst [smem:[#allocation13_spill]] %s1881_s23  ;;  %s31_s7 = sadd.s32 1, %s1893_s26 }
   0xc   : > { %2327 = sst [smem:[#allocation14_spill]] %s1893_s26  ;;  %s34_s8 = sadd.s32 1, %s1897_s27 }
   0xd   : > { %2328 = sst [smem:[#allocation15_spill]] %s1897_s27  ;;  %p32_p0 = scmp.ge.s32.totalorder %s31_s7, 2 }
   0xe   : > { %s41_s9 = sadd.s32 1, %s1881_s23  ;;  %p48_p1 = scmp.ne.s32.totalorder %s1881_s23, %s1877_s22 }
   0xf   : > { %p49_p2 = scmp.eq.s32.totalorder %s1901_s28, 0  ;;  %s2353_s7 = smov (%p32_p0, %s31_s7), 0 }
  0x10   : > { %2329 = sst [smem:[#allocation16_spill]] %s2353_s7  ;;  %s2355_s8 = smov (!%p32_p0, %s34_s8), %s1897_s27 }
  0x11   : > { %p2004_p3 = por %p49_p2, %p48_p1  ;;  %p54_p4 = scmp.ne.s32.totalorder %s1877_s22, %s1873_s21 }
  0x12   : > { %p36_p5 = scmp.ge.s32.totalorder %s2355_s8, 2  ;;  %p55_p6 = scmp.eq.s32.totalorder %s1456_s29, 0 }
  0x13   : > { %p208_p7 = scmp.eq.s32.totalorder %s1456_s29, 3  ;;  %p214_p8 = scmp.eq.s32.totalorder %s1457_s30, 3 }
  0x14   : > { %s2357_s8 = smov (%p36_p5, %s2355_s8), 0  ;;  %p2012_p9 = por %p55_p6, %p54_p4 }
  0x15   : > { %2331 = sst [smem:[#allocation17_spill]] %s2357_s8  ;;  %p2016_p10 = por %p208_p7, %p48_p1 }
  0x16   : > { %s38_s13 = ssub.s32 %s1897_s27, %s2357_s8  ;;  %p2022_p11 = por %p214_p8, %p54_p4 }
  0x17   : > { %s2333_s12 = scalar_select %p2016_p10, 1, 0 }
  0x18   : > { %s2334_s14 = scalar_select %p2022_p11, 1, 0 }
  0x19   : > { %p39_p12 = scmp.eq.s32.totalorder %s38_s13, 0  ;;  %p1666_p13 = scmp.lt.s32.totalorder %s1901_s28, 4 }
  0x1a   : > { %2335 = sst [smem:[#allocation18_spill]] %s2334_s14  ;;  %s234_s15 = sand.u32 1, %s1881_s23  }
  0x1b   : > { %s2029_s16 = scalar_select %p39_p12, %s1881_s23, %s41_s9  }
  0x1c   : > { %s1460_s17 = sshll.u32 %s234_s15, 3  ;;  %s1461_s18 = sshll.u32 %s1897_s27, 7 }
  0x1d   : > { %2336 = sst [smem:[#allocation19_spill]] %s2029_s16  ;;  %s2337_s0 = sld [smem:[#allocation20_spill]] }
  0x1e   : > { %s238_s30 = scalar_lea.vmem [#allocation5], %s1460_s17  ;;  %p2041_p0 = pnand %p1666_p13, %p2004_p3 }
  0x1f   : > { %s245_s8 = sshll.u32 %s238_s30, 4  ;;  %s235_s9 = scalar_lea.sflag [#allocation6], %s234_s15  ;;  %s2037_s8 = int_to_ptr.vmem [resolvable:$true] %s245_s8 }
  0x20   : > { %p1775_p5 = pneg %p2041_p0 }
  0x23   : > { %s2035_s29 = scalar_lea.hbm %s2337_s0, %s1461_s18  ;;  %s1778_s10 = scalar_lea.hbm %s2337_s0, 256 }
  0x24   : > { %s1773_s18 = scalar_lea.hbm %s2035_s29, 128  ;;  %p1779_p3 = scmp.lt.u32.totalorder %s2035_s29, %s2337_s0 }
  0x25   : > { %p1774_p4 = scmp.ne.s32.totalorder %s2035_s29, %s1773_s18  ;;  %p1780_p8 = scmp.lt.u32.totalorder %s1778_s10, %s1773_s18 }
  0x26   : > { %p1782_p13 = scmp.lt.u32.totalorder %s1773_s18, %s2035_s29 }
  0x27   : > { %p1776_p6 = pnand %p1775_p5, %p1774_p4  ;;  %p1781_p12 = por %p1780_p8, %p1779_p3 }
  0x29   : > { %p1777_p7 = pneg %p1776_p6  ;;  %p1783_p1 = por %p1782_p13, %p1781_p12 }
  0x2b   : > { %p1784_p2 = pnand %p1783_p1, %p1777_p7 }
  0x2d   : > { %1787 = shalt.err (!%p1784_p2)
}
  0x2e   : > { %s1788_s15 = scalar_lea.vmem %s2037_s8, 128  ;;  %s1903_s17 = smov [#allocation5]  }
  0x2f   : > { %p1789_p4 = scmp.ne.s32.totalorder %s2037_s8, %s1788_s15  ;;  %s1793_s19 = sshll.u32 %s1903_s17, 4  ;;  %s1794_s19 = int_to_ptr.vmem [resolvable:$false] %s1793_s19 }
  0x30   : > { %s1795_s20 = scalar_lea.vmem %s1794_s19, 256  ;;  %p1796_p10 = scmp.lt.s32.totalorder %s2037_s8, %s1794_s19 }
  0x31   : > { %p1791_p6 = pnand %p1789_p4, %p1775_p5  ;;  %p1797_p3 = scmp.lt.s32.totalorder %s1795_s20, %s1788_s15 }
  0x33   : > { %p1792_p11 = pneg %p1791_p6  ;;  %p1798_p8 = por %p1797_p3, %p1796_p10 }
  0x35   : > { %p1799_p12 = pnand %p1798_p8, %p1792_p11 }
  0x37   : > { %1802 = shalt.err (!%p1799_p12)
}
  0x38   : > { %1661 = dma.hbm_to_vmem [thread:$0]  (!%p2041_p0), %s2035_s29, 128, %s2037_s8, %s235_s9  }
  0x39   : > { %p2339_p1 = scmp.lt.s32.totalorder %s1901_s28, 5  ;;  %p2340_p2 = scmp.ge.s32.totalorder %s1901_s28, 1 }
  0x3b   : > { %p290_p5 = pnand %p2340_p2, %p2339_p1 }
  0x3c   : > { %s2077_s18 = sand.u32 (!%p290_p5), 1, %s1877_s22  }
  0x3d   : > { %293 = sbr.rel (%p290_p5) target bundleno = 3570 (0xdf2), region = 44  ;;  %s1463_s10 = sshll.u32 (!%p290_p5), %s2077_s18, 3 }
  0x3e   : > { %s296_s30 = scalar_lea.sflag (!%p290_p5), [#allocation6], %s2077_s18  ;;  %s299_s15 = scalar_lea.vmem (!%p290_p5), [#allocation5], %s1463_s10 }
  0x44   : > { %1864 = dma.done.wait (%p2012_p9), %s296_s30, 128  }
  0x45   : > { %1866 = vsyncadd (%p2012_p9), %s296_s30, 4294967168  ;;  %p352_p10 = scmp.lt.s32.totalorder %s1885_s24, 1  ;;  %s2108_s17 = scalar_lea.vmem [#allocation8], %s1463_s10 }
  0x46   : > { %p1474_p9 = scmp.ne.s32.totalorder %s1885_s24, 0 }
  0x47   : > { %s353_s8 = scalar_select %p352_p10, %s1885_s24, 1 }
  0x48   : > { %380 = sbr.rel (%p1474_p9) target bundleno = 79 (0x4f), region = 52  ;;  %v381_v0 = vld [vmem:[%s299_s15] sm:$0xff] (!%p1474_p9)  ;;  %vm382_vm0 = vcmask (!%p1474_p9), 261120  }
  0x49   : > { %s1503_s29 = sshll.u32 %s353_s8, 4  ;;  %s1506_s13 = sshll.u32 %s353_s8, 5  ;;  %383 = vst.msk [vmem:[#allocation2] sm:$0xff] (!%p1474_p9), %vm382_vm0, %v381_v0 }
  0x4a   : > { %s356_s19 = scalar_lea.vmem %s2309_s1, %s1503_s29  ;;  %s2093_s7 = scalar_lea.vmem %s2310_s2, %s1503_s29 }
  0x4b   : > { %s2098_s11 = scalar_lea.vmem %s2311_s3, %s1503_s29  ;;  %s2103_s23 = scalar_lea.vmem %s2312_s4, %s1506_s13 }
  0x4c   : > { %s1473_s22 = sshll.u32 %s353_s8, 3 }
  0x4d   : > { %s375_s9 = scalar_lea.vmem %s2313_s5, %s1473_s22 }
  0x4f PF: > { %v1745_v1 = vld [vmem:[%s356_s19] sm:$0xff]   ;;  %v1904_v2 = vmov 0.0   ;;  %v1746_v3 = vld [vmem:[%s356_s19 + $0x8] sm:$0xff]   ;;  %vm1905_vm1 = vmmov 0   ;;  %vm407_vm2 = vcmask 261120   ;;  %v391_v6 = vlaneseq  ;;  %s1906_s0 = smov 96  }
  0x50   : > { %1542 = vmatprep.subr.bf16.mxu1 %v1904_v2  ;;  %1556 = vmatprep.subr.bf16.mxu0 %v1904_v2  ;;  %v2115_v4 = vld [vmem:[#allocation2] sm:$0xff]  ;;  %vm451_vm3 = vcmask 785408   ;;  %s1907_s21 = smov 120   ;;  %s1908_s22 = smov 88   ;;  %vm464_vm4 = vcmask 64512   ;;  %vm528_vm5 = vcmask 1043456  }
  0x51   : > { %1543 = vmatpush3.bf16.msra.mxu1 %v1745_v1  ;;  %1546 = vmatprep.mubr.msk.bf16.mxu1 %vm1905_vm1, %v1904_v2  ;;  %v386_v5 = vpack.c.bf16 %v2115_v4, %v2115_v4  ;;  %v2126_v7 = vshrl.u32 %v391_v6, 7  ;;  %v2129_v9 = vld [vmem:[%s375_s9] sm:$0xff]  ;;  %s1909_s26 = smov 56   ;;  %s1910_s27 = smov 64   ;;  %vm1227_vm6 = vcmask 523264  }
  0x52   : > { %1544 = vmatprep.subr.bf16.mxu1 %v1904_v2  ;;  %1558 = vmatprep.mubr.msk.bf16.mxu0 %vm1905_vm1, %v1904_v2  ;;  %s1911_s14 = smov 80   ;;  %s1912_s16 = smov 112   ;;  %v454_v60 = vld [vmem:[%s2093_s7 + $0x4] sm:$0xf] }
  0x53   : > { %v393_v8 = vsub.s32 0, %v2126_v7  ;;  %v689_v61 = vsel %vm528_vm5, %v454_v60, 0  ;;  %s1913_s10 = smov 72   ;;  %s1914_s15 = smov 104  }
  0x54   : > { %s1915_s8 = smov 48   ;;  %s1916_s29 = smov 40  }
  0x55   : > { %1545 = vmatpush3.bf16.msra.mxu1 %v1746_v3  ;;  %v394_v10 = vrot.slane %v2129_v9, %v393_v8  ;;  %v453_v3 = vld [vmem:[%s2093_s7] sm:$0xf]  ;;  %p1498_p11 = scmp.ne.s32.totalorder %s1885_s24, 1 }
  0x56   : > { %1550 = vmatprep.subr.bf16.mxu1 %v1904_v2 }
  0x58   : > { %1547 = vmatmul.mubr.msk.bf16.vlgmr.msra.gmra.mrb[0].mxu1 %vm407_vm2, %v386_v5 }
  0x59   : > { %1552 = vmatprep.mubr.msk.bf16.mxu1 %vm1905_vm1, %v1904_v2 }
 0x12b   : > { %v445_v11 = vpop.f32.mrb[0].mxu1 }
 0x12c   : > { %v446_v12 = vadd.f32 %v445_v11, %v394_v10  ;;  %v1548_v13 = vpop.f32.mrb[1].mxu1  ;;  %v735_v10 = vsel %vm528_vm5, %v453_v3, 0 }
 0x12d   : > { %v448_v14 = vpop.f32.mrb[2].mxu1 }
 0x12e   : > { %452 = vst.msk [vmem:[#allocation3] sm:$0xff] %vm451_vm3, %v446_v12  ;;  %v1549_v15 = vpop.f32.mrb[3].mxu1 }
 0x135   : > { %v457_v16 = vld [vmem:[#allocation3] sm:$0xff] }
 0x136   : > { %v2132_v17 = vpack.c.bf16 %v457_v16, %v457_v16  ;;  %v458_v18 = vmul.f32 0.35355338, %v457_v16 }
 0x138   : > { %462 = vrot.lane.b32.xlu0 %v2132_v17, %s1906_s0  ;;  %v2135_v19 = vpack.c.bf16 %v458_v18, %v458_v18 }
 0x13a   : > { %574 = vrot.lane.b32.xlu1 %v2135_v19, %s1907_s21 }
 0x13c   : > { %576 = vrot.lane.b32.xlu0 %v2132_v17, %s1908_s22 }
 0x1aa   : > { %v463_v20 = vpop.permute.xlu0 %462 }
 0x1ab   : > { %v469_v21 = vsel %vm464_vm4, %v463_v20, 0 }
 0x1ac   : > { %1551 = vmatpush3.bf16.xpose.msra.mxu1 %v469_v21  ;;  %v575_v24 = vpop.permute.xlu1 %574 }
 0x1ad   : > { %1562 = vmatprep.subr.bf16.mxu1 %v1904_v2 }
 0x1ae   : > { %v577_v22 = vpop.permute.xlu0 %576 }
 0x1af   : > { %v582_v23 = vsel %vm464_vm4, %v577_v22, 0 }
 0x1b3   : > { %1553 = vmatmul.mubr.msk.bf16.vlgmr.msra.gmra.mrb[4].mxu1 %vm464_vm4, %v2135_v19 }
 0x1b4   : > { %1563 = vmatpush3.bf16.xpose.msra.mxu1 %v582_v23  ;;  %1564 = vmatprep.mubr.msk.bf16.mxu1 %vm1905_vm1, %v1904_v2 }
 0x1b5   : > { %1574 = vmatprep.subr.bf16.mxu1 %v1904_v2 }
 0x1bb   : > { %1565 = vmatmul.mubr.msk.bf16.vlgmr.msra.gmra.mrb[8].mxu1 %vm464_vm4, %v575_v24 }
 0x1bc   : > { %1576 = vmatprep.mubr.msk.bf16.mxu1 %vm1905_vm1, %v1904_v2  ;;  %1575 = vmatpush3.bf16.msra.mxu1 %v689_v61 }
 0x1bd   : > { %1580 = vmatprep.subr.bf16.mxu1 %v1904_v2 }
 0x286   : > { %v505_v25 = vpop.f32.mrb[4].mxu1 }
 0x287   : > { %v1554_v26 = vpop.f32.mrb[5].mxu1  ;;  %v511_v27 = vsel %vm464_vm4, %v505_v25, -inf }
 0x288   : > { %512 = vmax.xlane.f32.xlu1 %v511_v27  ;;  %v508_v28 = vpop.f32.mrb[6].mxu1 }
 0x289   : > { %v1555_v29 = vpop.f32.mrb[7].mxu1 }
 0x28e   : > { %v618_v30 = vpop.f32.mrb[8].mxu1 }
 0x28f   : > { %v1566_v31 = vpop.f32.mrb[9].mxu1  ;;  %v624_v32 = vsel %vm464_vm4, %v618_v30, -inf }
 0x290   : > { %625 = vmax.xlane.f32.xlu0 %v624_v32  ;;  %v621_v33 = vpop.f32.mrb[10].mxu1 }
 0x291   : > { %v1567_v34 = vpop.f32.mrb[11].mxu1 }
 0x292   : > { %v455_v34 = vld [vmem:[%s2093_s7 + $0x8] sm:$0xf] }
 0x299   : > { %636 = vrot.lane.b32.xlu1 %v2132_v17, %s1909_s26 }
 0x315   : > { %v513_v35 = vpop.xlane.xlu1 %512 }
 0x316   : > { %v514_v36 = vsub.f32 %v505_v25, %v513_v35  ;;  %v892_v35 = vsel %vm528_vm5, %v455_v34, 0  ;;  %v1751_v34 = vld [vmem:[%s2103_s23 + $0x10] sm:$0xff]  }
 0x318   : > { %v515_v37 = vmul.f32 1.442695, %v514_v36 }
 0x319   : > { %v637_v46 = vpop.permute.xlu1 %636 }
 0x31a   : > { %1753 = vpow2.f32 %v515_v37  ;;  %v642_v53 = vsel %vm528_vm5, %v637_v46, 0 }
 0x31d   : > { %v626_v38 = vpop.xlane.xlu0 %625 }
 0x31e   : > { %v627_v39 = vsub.f32 %v618_v30, %v626_v38 }
 0x320   : > { %v628_v40 = vmul.f32 1.442695, %v627_v39 }
 0x322   : > { %1755 = vpow2.f32 %v628_v40 }
 0x324   : > { %v1754_v41 = vpop.eup %1753 }
 0x325   : > { %v517_v42 = vsel %vm464_vm4, %v1754_v41, 0.0 }
 0x326   : > { %518 = vadd.xlane.f32.xlu0 %v517_v42 }
 0x32c   : > { %v1756_v43 = vpop.eup %1755 }
 0x32d   : > { %v630_v44 = vsel %vm464_vm4, %v1756_v43, 0.0 }
 0x32e   : > { %631 = vadd.xlane.f32.xlu1 %v630_v44 }
 0x33c   : > { %523 = vrot.lane.b32.xlu0 %v2132_v17, %s1910_s27 }
 0x33f   : > { %779 = vrot.lane.b32.xlu1 %v2132_v17, %s1911_s14 }
 0x340   : > { %777 = vrot.lane.b32.xlu0 %v2135_v19, %s1912_s16 }
 0x3b3   : > { %v519_v45 = vpop.xlane.xlu0 %518 }
 0x3b4   : > { %1757 = vrcp.f32 %v519_v45 }
 0x3b7   : > { %v524_v47 = vpop.permute.xlu0 %523 }
 0x3b8   : > { %v530_v48 = vsel %vm528_vm5, %v524_v47, 0 }
 0x3b9   : > { %1557 = vmatpush3.bf16.msra.mxu0 %v530_v48 }
 0x3ba   : > { %1568 = vmatprep.subr.bf16.mxu0 %v1904_v2 }
 0x3bb   : > { %v632_v49 = vpop.xlane.xlu1 %631  ;;  %v778_v59 = vpop.permute.xlu0 %777 }
 0x3bc   : > { %1759 = vrcp.f32 %v632_v49 }
 0x3be   : > { %v1758_v50 = vpop.eup %1757 }
 0x3bf   : > { %v521_v51 = vmul.f32 %v1758_v50, %v1754_v41  ;;  %v780_v56 = vpop.permute.xlu1 %779 }
 0x3c0   : > { %v785_v58 = vsel %vm464_vm4, %v780_v56, 0 }
 0x3c1   : > { %v522_v52 = vpack.c.bf16 %v521_v51, %v521_v51 }
 0x3c3   : > { %1559 = vmatmul.mubr.msk.bf16.vlgmr.msra.gmra.mrb[0].mxu0 %vm464_vm4, %v522_v52 }
 0x3c4   : > { %1569 = vmatpush3.bf16.msra.mxu0 %v642_v53  ;;  %1570 = vmatprep.mubr.msk.bf16.mxu0 %vm1905_vm1, %v1904_v2 }
 0x3c5   : > { %1586 = vmatprep.subr.bf16.mxu0 %v1904_v2 }
 0x3c6   : > { %v1760_v54 = vpop.eup %1759 }
 0x3c7   : > { %v634_v55 = vmul.f32 %v1760_v54, %v1756_v43 }
 0x3c9   : > { %v635_v57 = vpack.c.bf16 %v634_v55, %v634_v55  ;;  %v456_v55 = vld [vmem:[%s2093_s7 + $0xc] sm:$0xf] }
 0x3cb   : > { %1571 = vmatmul.mubr.msk.bf16.vlgmr.msra.gmra.mrb[4].mxu0 %vm464_vm4, %v635_v57  ;;  %v1050_v57 = vsel %vm528_vm5, %v456_v55, 0 }
 0x3cc   : > { %1588 = vmatprep.mubr.msk.bf16.mxu0 %vm1905_vm1, %v1904_v2 }
 0x3cd   : > { %1587 = vmatpush3.bf16.xpose.msra.mxu0 %v785_v58 }
 0x3ce   : > { %1592 = vmatprep.subr.bf16.mxu0 %v1904_v2 }
 0x3d4   : > { %1589 = vmatmul.mubr.msk.bf16.vlgmr.msra.gmra.mrb[8].mxu0 %vm464_vm4, %v778_v59 }
 0x3d5   : > { %1594 = vmatprep.mubr.msk.bf16.mxu0 %vm1905_vm1, %v1904_v2 }
 0x496   : > { %v566_v62 = vpop.f32.mrb[0].mxu0 }
 0x497   : > { %v1560_v63 = vpop.f32.mrb[1].mxu0  ;;  %v572_v20 = vpack.c.bf16 %v566_v62, %v566_v62 }
 0x498   : > { %v569_v0 = vpop.f32.mrb[2].mxu0 }
 0x499   : > { %v1561_v1 = vpop.f32.mrb[3].mxu0 }
 0x49a   : > { %v1097_v1 = vsub.s32 1, %v2126_v7 }
 0x49e   : > { %v678_v5 = vpop.f32.mrb[4].mxu0 }
 0x49f   : > { %v684_v6 = vpack.c.bf16 %v678_v5, %v678_v5  ;;  %v1572_v8 = vpop.f32.mrb[5].mxu0 }
 0x4a0   : > { %v681_v11 = vpop.f32.mrb[6].mxu0 }
 0x4a1   : > { %v1573_v12 = vpop.f32.mrb[7].mxu0  ;;  %1577 = vmatmul.mubr.msk.bf16.vlgmr.msra.gmra.mrb[12].mxu1 %vm464_vm4, %v684_v6  ;;  %v1098_v6 = vrot.slane %v2129_v9, %v1097_v1 }
 0x4a2   : > { %1581 = vmatpush3.bf16.msra.mxu1 %v735_v10  ;;  %1582 = vmatprep.mubr.msk.bf16.mxu1 %vm1905_vm1, %v1904_v2 }
 0x4a3   : > { %1598 = vmatprep.subr.bf16.mxu1 %v1904_v2 }
 0x4a7   : > { %v821_v13 = vpop.f32.mrb[8].mxu0 }
 0x4a8   : > { %v1590_v14 = vpop.f32.mrb[9].mxu0  ;;  %v827_v15 = vsel %vm464_vm4, %v821_v13, -inf }
 0x4a9   : > { %828 = vmax.xlane.f32.xlu1 %v827_v15  ;;  %v824_v16 = vpop.f32.mrb[10].mxu0 }
 0x4aa   : > { %v1591_v18 = vpop.f32.mrb[11].mxu0 }
 0x4ad   : > { %1583 = vmatmul.mubr.msk.bf16.vlgmr.msra.gmra.mrb[12].mxu1 %vm464_vm4, %v572_v20  ;;  %v1747_v20 = vld [vmem:[%s2098_s11] sm:$0xff]  }
 0x4ae   : > { %1600 = vmatprep.mubr.msk.bf16.mxu1 %vm1905_vm1, %v1904_v2  ;;  %1599 = vmatpush3.bf16.msra.mxu1 %v892_v35  ;;  %v1752_v35 = vld [vmem:[%s2103_s23 + $0x18] sm:$0xff]  }
 0x4af   : > { %1610 = vmatprep.subr.bf16.mxu1 %v1904_v2 }
 0x4ba   : > { %937 = vrot.lane.b32.xlu1 %v2132_v17, %s1913_s10 }
 0x4be   : > { %935 = vrot.lane.b32.xlu1 %v2135_v19, %s1914_s15 }
 0x536   : > { %v829_v21 = vpop.xlane.xlu1 %828 }
 0x537   : > { %v830_v22 = vsub.f32 %v821_v13, %v829_v21  ;;  %v1748_v21 = vld [vmem:[%s2098_s11 + $0x8] sm:$0xff]  }
 0x539   : > { %v831_v23 = vmul.f32 1.442695, %v830_v22 }
 0x53a   : > { %v938_v30 = vpop.permute.xlu1 %937 }
 0x53b   : > { %1761 = vpow2.f32 %v831_v23  ;;  %v943_v32 = vsel %vm464_vm4, %v938_v30, 0 }
 0x53e   : > { %v936_v33 = vpop.permute.xlu1 %935 }
 0x545   : > { %v1762_v24 = vpop.eup %1761 }
 0x546   : > { %v833_v25 = vsel %vm464_vm4, %v1762_v24, 0.0 }
 0x547   : > { %834 = vadd.xlane.f32.xlu0 %v833_v25  ;;  %v1122_v25 = vsub.s32 5, %v2126_v7 }
 0x55d   : > { %839 = vrot.lane.b32.xlu0 %v2132_v17, %s1915_s8 }
 0x5d4   : > { %v835_v26 = vpop.xlane.xlu0 %834 }
 0x5d5   : > { %1763 = vrcp.f32 %v835_v26 }
 0x5d8   : > { %v840_v27 = vpop.permute.xlu0 %839 }
 0x5d9   : > { %v845_v28 = vsel %vm528_vm5, %v840_v27, 0 }
 0x5da   : > { %1593 = vmatpush3.bf16.msra.mxu0 %v845_v28 }
 0x5db   : > { %1604 = vmatprep.subr.bf16.mxu0 %v1904_v2 }
 0x5df   : > { %v1764_v19 = vpop.eup %1763 }
 0x5e0   : > { %v837_v29 = vmul.f32 %v1764_v19, %v1762_v24  ;;  %v1117_v24 = vsub.s32 4, %v2126_v7  ;;  %v1123_v19 = vrot.slane %v2129_v9, %v1122_v25 }
 0x5e2   : > { %v838_v31 = vpack.c.bf16 %v837_v29, %v837_v29  ;;  %v1118_v26 = vrot.slane %v2129_v9, %v1117_v24 }
 0x5e4   : > { %1595 = vmatmul.mubr.msk.bf16.vlgmr.msra.gmra.mrb[12].mxu0 %vm464_vm4, %v838_v31  ;;  %v1749_v31 = vld [vmem:[%s2103_s23] sm:$0xff]  }
 0x5e5   : > { %1605 = vmatpush3.bf16.xpose.msra.mxu0 %v943_v32  ;;  %1606 = vmatprep.mubr.msk.bf16.mxu0 %vm1905_vm1, %v1904_v2 }
 0x5e6   : > { %1622 = vmatprep.subr.bf16.mxu0 %v1904_v2 }
 0x5ec   : > { %1607 = vmatmul.mubr.msk.bf16.vlgmr.msra.gmra.mrb[16].mxu0 %vm464_vm4, %v936_v33  ;;  %v1750_v33 = vld [vmem:[%s2103_s23 + $0x8] sm:$0xff]  }
 0x5ed   : > { %1626 = vmatprep.mubr.msk.bf16.mxu0 %vm1905_vm1, %v1904_v2  ;;  %1623 = vmatpush3.bf16.msra.mxu0 %v1747_v20 }
 0x5ee   : > { %1624 = vmatprep.subr.bf16.mxu0 %v1904_v2 }
 0x5f1   : > { %1625 = vmatpush3.bf16.msra.mxu0 %v1748_v21 }
 0x5f2   : > { %1630 = vmatprep.subr.bf16.mxu0 %v1904_v2 }
 0x6b7   : > { %v881_v36 = vpop.f32.mrb[12].mxu0 }
 0x6b8   : > { %v887_v37 = vpack.c.bf16 %v881_v36, %v881_v36  ;;  %v1596_v38 = vpop.f32.mrb[13].mxu0  ;;  %v1132_v36 = vsub.s32 2, %v2126_v7 }
 0x6b9   : > { %v884_v39 = vpop.f32.mrb[14].mxu0 }
 0x6ba   : > { %v1597_v40 = vpop.f32.mrb[15].mxu0  ;;  %1601 = vmatmul.mubr.msk.bf16.vlgmr.msra.gmra.mrb[12].mxu1 %vm464_vm4, %v887_v37  ;;  %v1133_v37 = vrot.slane %v2129_v9, %v1132_v36 }
 0x6bb   : > { %1612 = vmatprep.mubr.msk.bf16.mxu1 %vm1905_vm1, %v1904_v2 }
 0x6bf   : > { %v979_v41 = vpop.f32.mrb[16].mxu0 }
 0x6c0   : > { %v1608_v42 = vpop.f32.mrb[17].mxu0  ;;  %v985_v43 = vsel %vm464_vm4, %v979_v41, -inf }
 0x6c1   : > { %986 = vmax.xlane.f32.xlu0 %v985_v43  ;;  %v982_v44 = vpop.f32.mrb[18].mxu0 }
 0x6c2   : > { %v1609_v45 = vpop.f32.mrb[19].mxu0 }
 0x6c3   : > { %v1201_v45 = vsub.s32 3, %v2126_v7 }
 0x6d7   : > { %997 = vrot.lane.b32.xlu0 %v2132_v17, %s1916_s29 }
 0x74e   : > { %v987_v46 = vpop.xlane.xlu0 %986 }
 0x74f   : > { %v988_v47 = vsub.f32 %v979_v41, %v987_v46  ;;  %v1202_v46 = vrot.slane %v2129_v9, %v1201_v45 }
 0x751   : > { %v989_v48 = vmul.f32 1.442695, %v988_v47 }
 0x752   : > { %v998_v49 = vpop.permute.xlu0 %997 }
 0x753   : > { %1765 = vpow2.f32 %v989_v48  ;;  %v1003_v50 = vsel %vm528_vm5, %v998_v49, 0 }
 0x754   : > { %1611 = vmatpush3.bf16.msra.mxu1 %v1003_v50 }
 0x755   : > { %1616 = vmatprep.subr.bf16.mxu1 %v1904_v2 }
 0x75d   : > { %v1766_v51 = vpop.eup %1765 }
 0x75e   : > { %v991_v52 = vsel %vm464_vm4, %v1766_v51, 0.0 }
 0x75f   : > { %992 = vadd.xlane.f32.xlu1 %v991_v52 }
 0x7ec   : > { %v993_v53 = vpop.xlane.xlu1 %992 }
 0x7ed   : > { %1767 = vrcp.f32 %v993_v53 }
 0x7f7   : > { %v1768_v54 = vpop.eup %1767 }
 0x7f8   : > { %v995_v56 = vmul.f32 %v1768_v54, %v1766_v51 }
 0x7fa   : > { %v996_v17 = vpack.c.bf16 %v995_v56, %v995_v56 }
 0x7fc   : > { %1613 = vmatmul.mubr.msk.bf16.vlgmr.msra.gmra.mrb[16].mxu1 %vm464_vm4, %v996_v17 }
 0x7fd   : > { %1617 = vmatpush3.bf16.msra.mxu1 %v1050_v57  ;;  %1618 = vmatprep.mubr.msk.bf16.mxu1 %vm1905_vm1, %v1904_v2 }
 0x8cf   : > { %v1039_v58 = vpop.f32.mrb[16].mxu1 }
 0x8d0   : > { %v1045_v59 = vpack.c.bf16 %v1039_v58, %v1039_v58  ;;  %v1614_v60 = vpop.f32.mrb[17].mxu1 }
 0x8d1   : > { %v1042_v61 = vpop.f32.mrb[18].mxu1  ;;  %v1287_v60 = vsub.s32 6, %v2126_v7 }
 0x8d2   : > { %v1615_v62 = vpop.f32.mrb[19].mxu1  ;;  %1619 = vmatmul.mubr.msk.bf16.vlgmr.msra.gmra.mrb[12].mxu1 %vm464_vm4, %v1045_v59  ;;  %v1292_v61 = vsub.s32 7, %v2126_v7 }
 0x8d3   : > { %v1288_v62 = vrot.slane %v2129_v9, %v1287_v60 }
 0x9a5   : > { %v1086_v63 = vpop.f32.mrb[12].mxu1 }
 0x9a6   : > { %1093 = vst.msk [vmem:[#allocation4] sm:$0xff] %vm407_vm2, %v1086_v63  ;;  %v1620_v0 = vpop.f32.mrb[13].mxu1 }
 0x9a7   : > { %v1089_v3 = vpop.f32.mrb[14].mxu1  ;;  %v1293_v0 = vrot.slane %v2129_v9, %v1292_v61 }
 0x9a8   : > { %v1621_v5 = vpop.f32.mrb[15].mxu1 }
 0x9ad   : > { %v1094_v8 = vld [vmem:[#allocation4] sm:$0xff] }
 0x9ae   : > { %v1099_v10 = vadd.f32 %v1098_v6, %v1094_v8 }
 0x9b0   : > { %v1100_v11 = vadd.f32 %v1099_v10, %v2115_v4 }
 0x9b2   : > { %v1101_v12 = vsel %vm407_vm2, %v1100_v11, 0.0 }
 0x9b3   : > { %1102 = vadd.xlane.f32.xlu1 %v1101_v12 }
 0xa40   : > { %v1103_v13 = vpop.xlane.xlu1 %1102 }
 0xa41   : > { %v1105_v14 = vmul.f32 0.03125, %v1103_v13 }
 0xa43   : > { %v1106_v15 = vsub.f32 %v1100_v11, %v1105_v14 }
 0xa45   : > { %v1107_v16 = vmul.f32 %v1106_v15, %v1106_v15 }
 0xa47   : > { %v1108_v18 = vsel %vm407_vm2, %v1107_v16, 0.0 }
 0xa48   : > { %1109 = vadd.xlane.f32.xlu1 %v1108_v18 }
 0xad5   : > { %v1110_v4 = vpop.xlane.xlu1 %1109 }
 0xad6   : > { %v1111_v22 = vmul.f32 0.03125, %v1110_v4 }
 0xad8   : > { %v1112_v23 = vadd.f32 1e-05, %v1111_v22 }
 0xada   : > { %1769 = vrsqrt.f32 %v1112_v23 }
 0xae4   : > { %v1770_v27 = vpop.eup %1769 }
 0xae5   : > { %v1114_v28 = vmul.f32 %v1770_v27, %v1106_v15 }
 0xae7   : > { %v1119_v29 = vmul.f32 %v1118_v26, %v1114_v28 }
 0xae9   : > { %v1124_v30 = vadd.f32 %v1123_v19, %v1119_v29 }
 0xaeb   : > { %v1125_v32 = vpack.c.bf16 %v1124_v30, %v1124_v30 }
 0xaed   : > { %1627 = vmatmul.mubr.msk.bf16.vlgmr.msra.gmra.mrb[20].mxu0 %vm407_vm2, %v1125_v32 }
 0xaee   : > { %1631 = vmatpush3.bf16.msra.mxu0 %v1749_v31  ;;  %1638 = vmatprep.mubr.msk.bf16.mxu0 %vm1905_vm1, %v1904_v2 }
 0xaef   : > { %1632 = vmatprep.subr.bf16.mxu0 %v1904_v2 }
 0xaf2   : > { %1633 = vmatpush3.bf16.msra.mxu0 %v1750_v33 }
 0xaf3   : > { %1634 = vmatprep.subr.bf16.mxu0 %v1904_v2 }
 0xaf6   : > { %1635 = vmatpush3.bf16.msra.mxu0 %v1751_v34 }
 0xaf7   : > { %1636 = vmatprep.subr.bf16.mxu0 %v1904_v2 }
 0xafa   : > { %1637 = vmatpush3.bf16.msra.mxu0 %v1752_v35 }
 0xbc0   : > { %v1183_v38 = vpop.f32.mrb[20].mxu0 }
 0xbc1   : > { %v1184_v39 = vadd.f32 %v1183_v38, %v1133_v37  ;;  %v1628_v40 = vpop.f32.mrb[21].mxu0 }
 0xbc2   : > { %v1186_v41 = vpop.f32.mrb[22].mxu0 }
 0xbc3   : > { %v1189_v42 = vmax.f32 %v1184_v39, 0.0  ;;  %v1629_v43 = vpop.f32.mrb[23].mxu0 }
 0xbc5   : > { %v1190_v44 = vpack.c.bf16 %v1189_v42, %v1189_v42 }
 0xbc7   : > { %1639 = vmatmul.mubr.msk.bf16.vlgmr.msra.gmra.mrb[24].mxu0 %vm1227_vm6, %v1190_v44 }
 0xc9a   : > { %v1265_v2 = vpop.f32.mrb[24].mxu0 }
 0xc9b   : > { %v1266_v47 = vadd.f32 %v1265_v2, %v1202_v46  ;;  %v1640_v48 = vpop.f32.mrb[25].mxu0 }
 0xc9c   : > { %v1268_v49 = vpop.f32.mrb[26].mxu0 }
 0xc9d   : > { %v1641_v50 = vpop.f32.mrb[27].mxu0  ;;  %v1271_v51 = vadd.f32 %v1266_v47, %v1124_v30 }
 0xc9f   : > { %v1272_v52 = vsel %vm407_vm2, %v1271_v51, 0.0 }
 0xca0   : > { %1273 = vadd.xlane.f32.xlu1 %v1272_v52 }
 0xd2d   : > { %v1274_v53 = vpop.xlane.xlu1 %1273 }
 0xd2e   : > { %v1275_v54 = vmul.f32 0.03125, %v1274_v53 }
 0xd30   : > { %v1276_v55 = vsub.f32 %v1271_v51, %v1275_v54 }
 0xd32   : > { %v1277_v56 = vmul.f32 %v1276_v55, %v1276_v55 }
 0xd34   : > { %v1278_v17 = vsel %vm407_vm2, %v1277_v56, 0.0 }
 0xd35   : > { %1279 = vadd.xlane.f32.xlu1 %v1278_v17 }
 0xdc2   : > { %v1280_v57 = vpop.xlane.xlu1 %1279 }
 0xdc3   : > { %v1281_v58 = vmul.f32 0.03125, %v1280_v57 }
 0xdc5   : > { %v1282_v59 = vadd.f32 1e-05, %v1281_v58 }
 0xdc7   : > { %1771 = vrsqrt.f32 %v1282_v59 }
 0xdd1   : > { %v1772_v63 = vpop.eup %1771 }
 0xdd2   : > { %v1284_v1 = vmul.f32 %v1772_v63, %v1276_v55  ;;  %1299 = sbr.rel (%p1498_p11) target bundleno = 3545 (0xdd9), region = 56 }
 0xdd4   : > { %v1289_v3 = vmul.f32 %v1288_v62, %v1284_v1 }
 0xdd6   : > { %v1294_v5 = vadd.f32 %v1293_v0, %v1289_v3 }
 0xdd8   : > { %1295 = vst.msk [vmem:[#allocation2] sm:$0xff] %vm407_vm2, %v1294_v5  ;;  %1300 = vst.msk [vmem:[%s2108_s17] sm:$0xff] (!%p1498_p11), %vm407_vm2, %v1294_v5 }
 0xdd9 PF: > { %s1500_s23 = sshll.u32 %s1889_s25, 7  ;;  %s1315_s20 = sshll.u32 %s2108_s17, 4  ;;  %s1316_s20 = int_to_ptr.vmem [resolvable:$true] %s1315_s20 }
 0xdda   : > { %s2259_s19 = scalar_lea.hbm %s2314_s6, %s1500_s23  ;;  %s1302_s11 = scalar_lea.sflag [#allocation7], %s2077_s18 }
 0xddb   : > { %s1803_s30 = scalar_lea.vmem %s1316_s20, 128  ;;  %p2341_p7 = scmp.ne.s32.totalorder %s2333_s12, 0 }
 0xddc   : > { %p1804_p0 = scmp.ne.s32.totalorder %s1316_s20, %s1803_s30  ;;  %s1917_s24 = smov [#allocation8]  }
 0xddd   : > { %s1807_s9 = sshll.u32 %s1917_s24, 4  ;;  %s1808_s9 = int_to_ptr.vmem [resolvable:$false] %s1807_s9 }
 0xdde   : > { %p1805_p13 = pnand %p1804_p0, %p2341_p7  ;;  %s1809_s0 = scalar_lea.vmem %s1808_s9, 256 }
 0xddf   : > { %p1810_p6 = scmp.lt.s32.totalorder %s1316_s20, %s1808_s9  ;;  %p1811_p3 = scmp.lt.s32.totalorder %s1809_s0, %s1803_s30 }
 0xde0   : > { %p1806_p4 = pneg %p1805_p13 }
 0xde1   : > { %p1812_p8 = por %p1811_p3, %p1810_p6 }
 0xde3   : > { %p1813_p12 = pnand %p1812_p8, %p1806_p4 }
 0xde5   : > { %1816 = shalt.err (!%p1813_p12)
}
 0xde6   : > { %s1817_s25 = scalar_lea.hbm %s2259_s19, 128  ;;  %s1821_s21 = scalar_lea.hbm %s2314_s6, 256 }
 0xde7   : > { %p1818_p1 = scmp.ne.s32.totalorder %s2259_s19, %s1817_s25  ;;  %p1822_p10 = scmp.lt.u32.totalorder %s2259_s19, %s2314_s6 }
 0xde8   : > { %p1823_p9 = scmp.lt.u32.totalorder %s1821_s21, %s1817_s25  ;;  %p1825_p0 = scmp.lt.u32.totalorder %s1817_s25, %s2259_s19 }
 0xde9   : > { %p1819_p2 = pnand %p1818_p1, %p2341_p7 }
 0xdea   : > { %p1824_p11 = por %p1823_p9, %p1822_p10 }
 0xdeb   : > { %p1820_p5 = pneg %p1819_p2 }
 0xdec   : > { %p1826_p13 = por %p1825_p0, %p1824_p11 }
 0xdee   : > { %p1827_p4 = pnand %p1826_p13, %p1820_p5 }
 0xdf0   : > { %1830 = shalt.err (!%p1827_p4)
}
 0xdf1   : > { %1656 = dma.vmem_to_hbm [thread:$0]  (%p2341_p7), %s1316_s20, 128, %s2259_s19, %s1302_s11  }
 0xdf2 PF: > { %s2342_s27 = sld [smem:[#allocation11_spill]]  ;;  %s2343_s14 = sld [smem:[#allocation18_spill]] }
 0xdf3   : > { %p1667_p6 = scmp.ge.s32.totalorder %s1901_s28, 2 }
 0xdf8   : > { %s1327_s16 = sand.u32 1, %s2342_s27   ;;  %p2344_p3 = scmp.ne.s32.totalorder %s2343_s14, 0 }
 0xdf9   : > { %s1328_s10 = scalar_lea.sflag [#allocation7], %s1327_s16 }
 0xdfa   : > { %p1663_p8 = pnand %p1667_p6, %p2344_p3 }
 0xdfc   : > { %1868 = dma.done.wait (!%p1663_p8), %s1328_s10, 128  }
 0xdfd   : > { %1870 = vsyncadd (!%p1663_p8), %s1328_s10, 4294967168  ;;  %s22_s28 = sadd.s32 1, %s1901_s28   ;;  %s2345_s21 = sld [smem:[#allocation12_spill]] }
 0xdfe   : > { %p19_p12 = scmp.ge.s32.totalorder %s22_s28, 6   ;;  %s2346_s22 = sld [smem:[#allocation13_spill]] }
 0xdff   : > { %s2347_s23 = sld [smem:[#allocation19_spill]]  ;;  %s2348_s24 = sld [smem:[#allocation14_spill]] }
 0xe00   : > { %s2349_s25 = sld [smem:[#allocation15_spill]]  ;;  %s2350_s26 = sld [smem:[#allocation16_spill]] }
 0xe01   : > { %s2351_s27 = sld [smem:[#allocation17_spill]]  ;;  %21 = sbr.rel (!%p19_p12) target bundleno = 9 (0x9), region = 112 }
 0xe08   :  { %1333 = vsyncpa [#allocation6], 1 }
 0xe09   :  { %1335 = vsyncpa [#allocation6 + $0x1], 1 }
 0xe0a   :  { %1336 = vsyncpa [#allocation7], 1 }
 0xe0b   :  { %1338 = vsyncpa [#allocation7 + $0x1], 1 }

</bundles_post_ra>
